<compile_context>
chip_gen: v6e
topology: v6e:2x2x1
jax: 0.10.0
libtpu: 0.0.40
codegen_flags: <defaults>
</compile_context>

<pallas_src>
import functools
import math

import jax
import jax.numpy as jnp
from jax import lax
from jax.experimental import pallas as pl
from jax.experimental.pallas import tpu as pltpu


_NEG_INF = -1e30  # finite "masked" value (safer than -inf for fully-masked rows)


# ---------------------------------------------------------------------------
# Kernel A: fused QKV projection, head-major output via BlockSpec indexing.
# ---------------------------------------------------------------------------
def _qkv_proj_kernel(x_ref, wq_ref, wk_ref, wv_ref, bq_ref, bk_ref, bv_ref,
                     q_ref, k_ref, v_ref, *, scale):
    x = x_ref[0]                                                     # (ts, D)
    q = jnp.dot(x, wq_ref[0], preferred_element_type=jnp.float32) + bq_ref[0]
    k = jnp.dot(x, wk_ref[0], preferred_element_type=jnp.float32) + bk_ref[0]
    v = jnp.dot(x, wv_ref[0], preferred_element_type=jnp.float32) + bv_ref[0]
    q_ref[0, 0] = (q * scale).astype(q_ref.dtype)   # fold 1/sqrt(dh) into Q
    k_ref[0, 0] = k.astype(k_ref.dtype)
    v_ref[0, 0] = v.astype(v_ref.dtype)


# ---------------------------------------------------------------------------
# Kernel B: head-batched attention (online softmax over key chunks) + out_proj.
# ---------------------------------------------------------------------------
def _attention_kernel(q_ref, k_ref, v_ref, wo_ref, bo_ref, o_ref, *,
                      kv_chunk, causal_mask, approx_recip):
    H, tq, dh = q_ref.shape[1], q_ref.shape[2], q_ref.shape[3]
    S = k_ref.shape[2]
    q_blk = pl.program_id(1)

    q = q_ref[0]                                                     # (H, tq, dh)

    n_chunks = S // kv_chunk
    m = jnp.full((H, tq, 1), _NEG_INF, jnp.float32)
    l = jnp.zeros((H, tq, 1), jnp.float32)
    acc = jnp.zeros((H, tq, dh), jnp.float32)

    # Static (unrolled) chunk loop: bounds the live score tensor to
    # (H, tq, kv_chunk).  TODO(synk): skip fully-masked chunks for causal.
    for c in range(n_chunks):
        c0, c1 = c * kv_chunk, (c + 1) * kv_chunk
        k_c = k_ref[0, :, c0:c1, :]                                  # (H, tk, dh)
        v_c = v_ref[0, :, c0:c1, :]

        s = jnp.einsum('hqd,hkd->hqk', q, k_c,
                       preferred_element_type=jnp.float32)           # (H, tq, tk)
        if causal_mask:
            qi = q_blk * tq + lax.broadcasted_iota(jnp.int32, (tq, kv_chunk), 0)
            ki = c0 + lax.broadcasted_iota(jnp.int32, (tq, kv_chunk), 1)
            s = jnp.where((ki > qi)[None, :, :], _NEG_INF, s)

        m_new = jnp.maximum(m, jnp.max(s, axis=-1, keepdims=True))
        alpha = jnp.exp(m - m_new)
        p = jnp.exp(s - m_new)
        l = alpha * l + jnp.sum(p, axis=-1, keepdims=True)
        acc = alpha * acc + jnp.einsum('hqk,hkd->hqd',
                                       p.astype(v_c.dtype), v_c,
                                       preferred_element_type=jnp.float32)
        m = m_new

    inv_l = pl.reciprocal(l, approx=approx_recip)                    # EUP slot
    attn = (acc * inv_l).astype(wo_ref.dtype)                        # (H, tq, dh)

    # out_proj without concatenating heads: per-head batched GEMM + head sum.
    out = jnp.einsum('hqd,hdo->hqo', attn, wo_ref[...],
                     preferred_element_type=jnp.float32)
    out = jnp.sum(out, axis=0) + bo_ref[...]                         # (tq, D)
    o_ref[0] = out.astype(o_ref.dtype)


# ---------------------------------------------------------------------------
# Wrapper
# ---------------------------------------------------------------------------
def _pick_divisor(n, candidates):
    for c in candidates:
        if c <= n and n % c == 0:
            return c
    return n


def self_attention(x, w_in, b_in, w_out, b_out, *, n_heads,
                   causal_mask=False, q_block_size=None, kv_chunk_size=None):
    """x: (B, S, D); w_in: (3D, D); b_in: (3D,); w_out: (D, D); b_out: (D,)."""
    B, S, D = x.shape
    assert D % n_heads == 0
    H = n_heads
    dh = D // H
    dtype = x.dtype
    itemsize = jnp.dtype(dtype).itemsize
    f32b = 4
    dh_pad = max(dh, 128)          # lane padding of head-major tiles (dh < 128)

    # --- block sizes -------------------------------------------------------
    # tq defaults to 128: matches the v5e 4x128 MXU and keeps the score/KV
    # footprint inside v7x's 64 MiB VMEM; v6e users may pass 256.
    tq = _pick_divisor(S, (q_block_size or 128, 128, 64, 32, 16, 8))
    ts = _pick_divisor(S, (256, 128, 64, 32, 16, 8))       # projection seq tile
    if kv_chunk_size is not None and S % kv_chunk_size == 0:
        kv_chunk = min(kv_chunk_size, S)
    elif S <= 1024:
        kv_chunk = S
    else:
        kv_chunk = _pick_divisor(S, (1024, 512, 256, 128))
    nq, ns = S // tq, S // ts

    # --- one-time weight re-layout (outside the kernel, plain XLA) ----------
    scale = 1.0 / math.sqrt(dh)
    w_in = w_in.astype(dtype)
    b_in = b_in.astype(dtype)
    w_out = w_out.astype(dtype)
    b_out = b_out.astype(dtype)

    def head_weights(w):            # (D_out, D_in) torch layout -> (H, D, dh)
        return jnp.transpose(jnp.transpose(w).reshape(D, H, dh), (1, 0, 2))

    wq_h = head_weights(w_in[0 * D:1 * D, :])
    wk_h = head_weights(w_in[1 * D:2 * D, :])
    wv_h = head_weights(w_in[2 * D:3 * D, :])
    bq_h = b_in[0 * D:1 * D].reshape(H, 1, dh)
    bk_h = b_in[1 * D:2 * D].reshape(H, 1, dh)
    bv_h = b_in[2 * D:3 * D].reshape(H, 1, dh)
    wo_h = jnp.transpose(w_out).reshape(H, dh, D)                   # (H, dh, D)
    bo = b_out.reshape(1, D)

    # --- kernel A: QKV projection -> head-major (B, H, S, dh) ---------------
    est_a = (2 * ts * D * itemsize                      # x block (2 buffers)
             + 3 * 2 * (D * dh_pad + dh_pad) * itemsize  # per-head W/b blocks
             + 3 * 2 * ts * dh_pad * itemsize            # q/k/v output blocks
             + 4 * ts * dh_pad * f32b + ts * D * f32b)   # f32 temporaries
    vmem_a = int(min(max(2 * est_a, 32 << 20), 56 << 20))

    qkv_shape = jax.ShapeDtypeStruct((B, H, S, dh), dtype)
    hw_spec = pl.BlockSpec((1, D, dh), lambda b, s, h: (h, 0, 0))
    hb_spec = pl.BlockSpec((1, 1, dh), lambda b, s, h: (h, 0, 0))
    hm_out_spec = pl.BlockSpec((1, 1, ts, dh), lambda b, s, h: (b, h, s, 0))

    q_hm, k_hm, v_hm = pl.pallas_call(
        functools.partial(_qkv_proj_kernel, scale=scale),
        out_shape=(qkv_shape, qkv_shape, qkv_shape),
        grid=(B, ns, H),
        in_specs=[
            pl.BlockSpec((1, ts, D), lambda b, s, h: (b, s, 0)),  # x (resident over h)
            hw_spec, hw_spec, hw_spec,                            # Wq/Wk/Wv per head
            hb_spec, hb_spec, hb_spec,                            # bq/bk/bv per head
        ],
        out_specs=(hm_out_spec, hm_out_spec, hm_out_spec),
        compiler_params=pltpu.CompilerParams(
            dimension_semantics=("parallel", "parallel", "arbitrary"),
            vmem_limit_bytes=vmem_a),
    )(x, wq_h, wk_h, wv_h, bq_h, bk_h, bv_h)

    # --- kernel B: attention + out_proj -------------------------------------
    est_b = (2 * H * tq * dh_pad * itemsize             # q block
             + 2 * 2 * H * S * dh_pad * itemsize        # K and V blocks
             + H * dh * D * itemsize + D * itemsize     # resident Wo / bo
             + 2 * tq * D * itemsize                    # output block
             + 2 * H * tq * kv_chunk * f32b             # scores + probabilities
             + 3 * H * tq * dh_pad * f32b               # acc / attn temporaries
             + H * tq * D * f32b                        # per-head out_proj partials
             + 4 * H * tq * 128 * f32b)                 # m / l / alpha
    vmem_b = int(min(max(2 * est_b, 32 << 20), 56 << 20))

    attn_kernel = functools.partial(
        _attention_kernel, kv_chunk=kv_chunk, causal_mask=causal_mask,
        approx_recip=(dtype != jnp.float32))

    def attn_call(single_buffer_weights):
        if single_buffer_weights:
            # Resident (constant-index) weights: one VMEM copy instead of two.
            wo_spec = pl.BlockSpec((H, dh, D), lambda b, q: (0, 0, 0),
                                   pipeline_mode=pl.Buffered(1))
            bo_spec = pl.BlockSpec((1, D), lambda b, q: (0, 0),
                                   pipeline_mode=pl.Buffered(1))
        else:
            wo_spec = pl.BlockSpec((H, dh, D), lambda b, q: (0, 0, 0))
            bo_spec = pl.BlockSpec((1, D), lambda b, q: (0, 0))

        return pl.pallas_call(
            attn_kernel,
            out_shape=jax.ShapeDtypeStruct((B, S, D), dtype),
            grid=(B, nq),
            in_specs=[
                pl.BlockSpec((1, H, tq, dh), lambda b, q: (b, 0, q, 0)),  # Q block
                pl.BlockSpec((1, H, S, dh), lambda b, q: (b, 0, 0, 0)),   # K (resident over q)
                pl.BlockSpec((1, H, S, dh), lambda b, q: (b, 0, 0, 0)),   # V (resident over q)
                wo_spec, bo_spec,
            ],
            out_specs=pl.BlockSpec((1, tq, D), lambda b, q: (b, q, 0)),
            compiler_params=pltpu.CompilerParams(
                # Both axes independent (K/V come from the pre-pass), so v7x's
                # two TensorCores can split the q blocks even at batch 1-2.
                dimension_semantics=("parallel", "parallel"),
                vmem_limit_bytes=vmem_b),
        )(q_hm, k_hm, v_hm, wo_h, bo)

    try:
        return attn_call(True)
    except Exception:
        # pl.Buffered(1) not supported by this JAX/Mosaic build: fall back to
        # default double-buffered resident weights (costs one extra Wo copy).
        return attn_call(False)


# ---------------------------------------------------------------------------
# Pure-JAX reference (mirrors the PyTorch forward exactly) + self-test
# ---------------------------------------------------------------------------
def _reference(x, w_in, b_in, w_out, b_out, n_heads, causal_mask=False):
    B, S, D = x.shape
    dh = D // n_heads
    qkv = x @ w_in.T + b_in
    q, k, v = jnp.split(qkv, 3, axis=-1)
    q = q.reshape(B, S, n_heads, dh).transpose(0, 2, 1, 3)
    k = k.reshape(B, S, n_heads, dh).transpose(0, 2, 1, 3)
    v = v.reshape(B, S, n_heads, dh).transpose(0, 2, 1, 3)
    w = jnp.einsum('bhqd,bhkd->bhqk', q, k)
    if causal_mask:
        qi = jnp.arange(S)[:, None]
        ki = jnp.arange(S)[None, :]
        w = jnp.where(ki > qi, -jnp.inf, w)
    w = w / math.sqrt(dh)
    w = jax.nn.softmax(w, axis=-1)
    o = jnp.einsum('bhqk,bhkd->bhqd', w, v)
    o = o.transpose(0, 2, 1, 3).reshape(B, S, D)
    return o @ w_out.T + b_out


if __name__ == "__main__":
    B, S, D, H = 2, 8, 32, 4   # batch, seq, d_embed, n_heads

    key = jax.random.PRNGKey(0)
    kx, k1, k2, k3, k4 = jax.random.split(key, 5)

    x = jax.random.normal(kx, (B, S, D), dtype=jnp.float32)

    bound = 1.0 / math.sqrt(D)
    w_in = jax.random.uniform(k1, (3 * D, D), jnp.float32, -bound, bound)
    b_in = jax.random.uniform(k2, (3 * D,), jnp.float32, -bound, bound)
    w_out = jax.random.uniform(k3, (D, D), jnp.float32, -bound, bound)
    b_out = jax.random.uniform(k4, (D,), jnp.float32, -bound, bound)

    for causal in (False, True):
        out = self_attention(x, w_in, b_in, w_out, b_out,
                             n_heads=H, causal_mask=causal)
        out = jax.block_until_ready(out)
        ref = _reference(x, w_in, b_in, w_out, b_out, H, causal_mask=causal)
        assert out.shape == (B, S, D)
        err = float(jnp.max(jnp.abs(out - ref)))
        assert jnp.allclose(out, ref, atol=1e-4, rtol=1e-4), \
            f"causal={causal} max abs err {err}"

    print("KERNEL_OK")
</pallas_src>

<mosaic_0001>
module attributes {stable_mosaic.version = 11 : i64} {
  func.func @_qkv_proj_kernel(%arg0: i32, %arg1: i32, %arg2: i32, %arg3: memref<1x8x32xf32, #tpu.memory_space<vmem>>, %arg4: memref<1x32x8xf32, #tpu.memory_space<vmem>>, %arg5: memref<1x32x8xf32, #tpu.memory_space<vmem>>, %arg6: memref<1x32x8xf32, #tpu.memory_space<vmem>>, %arg7: memref<1x1x8xf32, #tpu.memory_space<vmem>>, %arg8: memref<1x1x8xf32, #tpu.memory_space<vmem>>, %arg9: memref<1x1x8xf32, #tpu.memory_space<vmem>>, %arg10: memref<1x1x8x8xf32, #tpu.memory_space<vmem>>, %arg11: memref<1x1x8x8xf32, #tpu.memory_space<vmem>>, %arg12: memref<1x1x8x8xf32, #tpu.memory_space<vmem>>) attributes {dimension_semantics = [#tpu.dimension_semantics<parallel>, #tpu.dimension_semantics<parallel>, #tpu.dimension_semantics<arbitrary>], iteration_bounds = array<i64: 2, 1, 4>, scalar_prefetch = 0 : i64, scratch_operands = 0 : i64, tpu.core_type = #tpu.core_type<tc>, window_params = [{transform_indices = @transform_0, window_bounds = array<i64: 1, 8, 32>}, {transform_indices = @transform_1, window_bounds = array<i64: 1, 32, 8>}, {transform_indices = @transform_2, window_bounds = array<i64: 1, 32, 8>}, {transform_indices = @transform_3, window_bounds = array<i64: 1, 32, 8>}, {transform_indices = @transform_4, window_bounds = array<i64: 1, 1, 8>}, {transform_indices = @transform_5, window_bounds = array<i64: 1, 1, 8>}, {transform_indices = @transform_6, window_bounds = array<i64: 1, 1, 8>}, {transform_indices = @transform_7, window_bounds = array<i64: 1, 1, 8, 8>}, {transform_indices = @transform_8, window_bounds = array<i64: 1, 1, 8, 8>}, {transform_indices = @transform_9, window_bounds = array<i64: 1, 1, 8, 8>}]} {
    %c0 = arith.constant 0 : index
    %c0_0 = arith.constant 0 : index
    %c0_1 = arith.constant 0 : index
    %0 = vector.load %arg3[%c0, %c0_0, %c0_1] : memref<1x8x32xf32, #tpu.memory_space<vmem>>, vector<1x8x32xf32>
    %1 = vector.shape_cast %0 : vector<1x8x32xf32> to vector<8x32xf32>
    %c0_2 = arith.constant 0 : index
    %c0_3 = arith.constant 0 : index
    %c0_4 = arith.constant 0 : index
    %2 = vector.load %arg4[%c0_2, %c0_3, %c0_4] : memref<1x32x8xf32, #tpu.memory_space<vmem>>, vector<1x32x8xf32>
    %3 = vector.shape_cast %2 : vector<1x32x8xf32> to vector<32x8xf32>
    %cst = arith.constant dense<0.000000e+00> : vector<8x8xf32>
    %4 = tpu.matmul %1, %3, %cst {dimension_numbers = #tpu.dot_dimension_numbers<[1], [0], [0], [1], [0, 0, 1, 1], [], []>} : vector<8x32xf32>, vector<32x8xf32>, vector<8x8xf32> -> vector<8x8xf32>
    %c0_5 = arith.constant 0 : index
    %c0_6 = arith.constant 0 : index
    %c0_7 = arith.constant 0 : index
    %5 = vector.load %arg7[%c0_5, %c0_6, %c0_7] : memref<1x1x8xf32, #tpu.memory_space<vmem>>, vector<1x1x8xf32>
    %6 = vector.shape_cast %5 : vector<1x1x8xf32> to vector<1x8xf32>
    %7 = vector.broadcast %6 : vector<1x8xf32> to vector<8x8xf32>
    %8 = arith.addf %4, %7 : vector<8x8xf32>
    %c0_8 = arith.constant 0 : index
    %c0_9 = arith.constant 0 : index
    %c0_10 = arith.constant 0 : index
    %9 = vector.load %arg5[%c0_8, %c0_9, %c0_10] : memref<1x32x8xf32, #tpu.memory_space<vmem>>, vector<1x32x8xf32>
    %10 = vector.shape_cast %9 : vector<1x32x8xf32> to vector<32x8xf32>
    %cst_11 = arith.constant dense<0.000000e+00> : vector<8x8xf32>
    %11 = tpu.matmul %1, %10, %cst_11 {dimension_numbers = #tpu.dot_dimension_numbers<[1], [0], [0], [1], [0, 0, 1, 1], [], []>} : vector<8x32xf32>, vector<32x8xf32>, vector<8x8xf32> -> vector<8x8xf32>
    %c0_12 = arith.constant 0 : index
    %c0_13 = arith.constant 0 : index
    %c0_14 = arith.constant 0 : index
    %12 = vector.load %arg8[%c0_12, %c0_13, %c0_14] : memref<1x1x8xf32, #tpu.memory_space<vmem>>, vector<1x1x8xf32>
    %13 = vector.shape_cast %12 : vector<1x1x8xf32> to vector<1x8xf32>
    %14 = vector.broadcast %13 : vector<1x8xf32> to vector<8x8xf32>
    %15 = arith.addf %11, %14 : vector<8x8xf32>
    %c0_15 = arith.constant 0 : index
    %c0_16 = arith.constant 0 : index
    %c0_17 = arith.constant 0 : index
    %16 = vector.load %arg6[%c0_15, %c0_16, %c0_17] : memref<1x32x8xf32, #tpu.memory_space<vmem>>, vector<1x32x8xf32>
    %17 = vector.shape_cast %16 : vector<1x32x8xf32> to vector<32x8xf32>
    %cst_18 = arith.constant dense<0.000000e+00> : vector<8x8xf32>
    %18 = tpu.matmul %1, %17, %cst_18 {dimension_numbers = #tpu.dot_dimension_numbers<[1], [0], [0], [1], [0, 0, 1, 1], [], []>} : vector<8x32xf32>, vector<32x8xf32>, vector<8x8xf32> -> vector<8x8xf32>
    %c0_19 = arith.constant 0 : index
    %c0_20 = arith.constant 0 : index
    %c0_21 = arith.constant 0 : index
    %19 = vector.load %arg9[%c0_19, %c0_20, %c0_21] : memref<1x1x8xf32, #tpu.memory_space<vmem>>, vector<1x1x8xf32>
    %20 = vector.shape_cast %19 : vector<1x1x8xf32> to vector<1x8xf32>
    %21 = vector.broadcast %20 : vector<1x8xf32> to vector<8x8xf32>
    %22 = arith.addf %18, %21 : vector<8x8xf32>
    %cst_22 = arith.constant 0.353553385 : f32
    %23 = vector.broadcast %cst_22 : f32 to vector<8x8xf32>
    %24 = arith.mulf %8, %23 : vector<8x8xf32>
    %c0_23 = arith.constant 0 : index
    %c0_24 = arith.constant 0 : index
    %c0_25 = arith.constant 0 : index
    %c0_26 = arith.constant 0 : index
    %25 = vector.load %arg10[%c0_23, %c0_24, %c0_25, %c0_26] : memref<1x1x8x8xf32, #tpu.memory_space<vmem>>, vector<1x1x8x8xf32>
    %26 = vector.shape_cast %25 : vector<1x1x8x8xf32> to vector<8x8xf32>
    %27 = vector.shape_cast %24 : vector<8x8xf32> to vector<1x1x8x8xf32>
    tpu.vector_store %arg10[%c0_23, %c0_24, %c0_25, %c0_26], %27 {strides = array<i32>} : memref<1x1x8x8xf32, #tpu.memory_space<vmem>>, vector<1x1x8x8xf32>,
    %c0_27 = arith.constant 0 : index
    %c0_28 = arith.constant 0 : index
    %c0_29 = arith.constant 0 : index
    %c0_30 = arith.constant 0 : index
    %28 = vector.load %arg11[%c0_27, %c0_28, %c0_29, %c0_30] : memref<1x1x8x8xf32, #tpu.memory_space<vmem>>, vector<1x1x8x8xf32>
    %29 = vector.shape_cast %28 : vector<1x1x8x8xf32> to vector<8x8xf32>
    %30 = vector.shape_cast %15 : vector<8x8xf32> to vector<1x1x8x8xf32>
    tpu.vector_store %arg11[%c0_27, %c0_28, %c0_29, %c0_30], %30 {strides = array<i32>} : memref<1x1x8x8xf32, #tpu.memory_space<vmem>>, vector<1x1x8x8xf32>,
    %c0_31 = arith.constant 0 : index
    %c0_32 = arith.constant 0 : index
    %c0_33 = arith.constant 0 : index
    %c0_34 = arith.constant 0 : index
    %31 = vector.load %arg12[%c0_31, %c0_32, %c0_33, %c0_34] : memref<1x1x8x8xf32, #tpu.memory_space<vmem>>, vector<1x1x8x8xf32>
    %32 = vector.shape_cast %31 : vector<1x1x8x8xf32> to vector<8x8xf32>
    %33 = vector.shape_cast %22 : vector<8x8xf32> to vector<1x1x8x8xf32>
    tpu.vector_store %arg12[%c0_31, %c0_32, %c0_33, %c0_34], %33 {strides = array<i32>} : memref<1x1x8x8xf32, #tpu.memory_space<vmem>>, vector<1x1x8x8xf32>,
    return
  }
  func.func @transform_0(%arg0: i32, %arg1: i32, %arg2: i32) -> (i32, i32, i32) {
    %c0_i32 = arith.constant 0 : i32
    %c0_i32_0 = arith.constant 0 : i32
    return %arg0, %arg1, %c0_i32 : i32, i32, i32
  }
  func.func @transform_1(%arg0: i32, %arg1: i32, %arg2: i32) -> (i32, i32, i32) {
    %c0_i32 = arith.constant 0 : i32
    %c0_i32_0 = arith.constant 0 : i32
    %c0_i32_1 = arith.constant 0 : i32
    return %arg2, %c0_i32, %c0_i32_0 : i32, i32, i32
  }
  func.func @transform_2(%arg0: i32, %arg1: i32, %arg2: i32) -> (i32, i32, i32) {
    %c0_i32 = arith.constant 0 : i32
    %c0_i32_0 = arith.constant 0 : i32
    %c0_i32_1 = arith.constant 0 : i32
    return %arg2, %c0_i32, %c0_i32_0 : i32, i32, i32
  }
  func.func @transform_3(%arg0: i32, %arg1: i32, %arg2: i32) -> (i32, i32, i32) {
    %c0_i32 = arith.constant 0 : i32
    %c0_i32_0 = arith.constant 0 : i32
    %c0_i32_1 = arith.constant 0 : i32
    return %arg2, %c0_i32, %c0_i32_0 : i32, i32, i32
  }
  func.func @transform_4(%arg0: i32, %arg1: i32, %arg2: i32) -> (i32, i32, i32) {
    %c0_i32 = arith.constant 0 : i32
    %c0_i32_0 = arith.constant 0 : i32
    %c0_i32_1 = arith.constant 0 : i32
    return %arg2, %c0_i32, %c0_i32_0 : i32, i32, i32
  }
  func.func @transform_5(%arg0: i32, %arg1: i32, %arg2: i32) -> (i32, i32, i32) {
    %c0_i32 = arith.constant 0 : i32
    %c0_i32_0 = arith.constant 0 : i32
    %c0_i32_1 = arith.constant 0 : i32
    return %arg2, %c0_i32, %c0_i32_0 : i32, i32, i32
  }
  func.func @transform_6(%arg0: i32, %arg1: i32, %arg2: i32) -> (i32, i32, i32) {
    %c0_i32 = arith.constant 0 : i32
    %c0_i32_0 = arith.constant 0 : i32
    %c0_i32_1 = arith.constant 0 : i32
    return %arg2, %c0_i32, %c0_i32_0 : i32, i32, i32
  }
  func.func @transform_7(%arg0: i32, %arg1: i32, %arg2: i32) -> (i32, i32, i32, i32) {
    %c0_i32 = arith.constant 0 : i32
    %c0_i32_0 = arith.constant 0 : i32
    return %arg0, %arg2, %arg1, %c0_i32 : i32, i32, i32, i32
  }
  func.func @transform_8(%arg0: i32, %arg1: i32, %arg2: i32) -> (i32, i32, i32, i32) {
    %c0_i32 = arith.constant 0 : i32
    %c0_i32_0 = arith.constant 0 : i32
    return %arg0, %arg2, %arg1, %c0_i32 : i32, i32, i32, i32
  }
  func.func @transform_9(%arg0: i32, %arg1: i32, %arg2: i32) -> (i32, i32, i32, i32) {
    %c0_i32 = arith.constant 0 : i32
    %c0_i32_0 = arith.constant 0 : i32
    return %arg0, %arg2, %arg1, %c0_i32 : i32, i32, i32, i32
  }
}

</mosaic_0001>

<bundles_post_ra>
// kernel: tpu_custom_call.1
= control target key start
LH: loop header
LB: loop body
LE: loop exit
PB: predicated region body
PF: predicated region fallthrough
CT: control target
= control target key end

     0   :  { %s1629_s0 = inlined_call_operand.vmem [shape: f32[2,8,32], index: 0, kind: input, shape index: {}]   ;;  %s1630_s1 = inlined_call_operand.vmem [shape: f32[4,32,8], index: 1, kind: input, shape index: {}]   ;;  %s1631_s2 = inlined_call_operand.vmem [shape: f32[4,32,8], index: 2, kind: input, shape index: {}]   ;;  %s1632_s3 = inlined_call_operand.vmem [shape: f32[4,32,8], index: 3, kind: input, shape index: {}]   ;;  %s1633_s4 = inlined_call_operand.vmem [shape: f32[4,1,8], index: 4, kind: input, shape index: {}]   ;;  %s1634_s5 = inlined_call_operand.vmem [shape: f32[4,1,8], index: 5, kind: input, shape index: {}]   ;;  %s1635_s6 = inlined_call_operand.vmem [shape: f32[4,1,8], index: 6, kind: input, shape index: {}]   ;;  %s1636_s7 = inlined_call_operand.hbm [shape: f32[2,4,8,8], index: 7, kind: output, shape index: {0}]   ;;  %s1637_s8 = inlined_call_operand.hbm [shape: f32[2,4,8,8], index: 8, kind: output, shape index: {1}]   ;;  %s1638_s9 = inlined_call_operand.hbm [shape: f32[2,4,8,8], index: 9, kind: output, shape index: {2}]  }
   0x1   :  { %1647 = sst [smem:[#allocation14_spill]] %s1629_s0 }
   0x2   :  { %1648 = sst [smem:[#allocation15_spill]] %s1630_s1 }
   0x3   :  { %15 = vsyncpa [#allocation3], 0 }
   0x4   :  { %17 = vsyncpa [#allocation3 + $0x1], 0 }
   0x5   :  { %18 = vsyncpa [#allocation5], 0 }
   0x6   :  { %20 = vsyncpa [#allocation5 + $0x1], 0  ;;  %s1382_s30 = smov 0   ;;  %s1384_s10 = smov 0  }
   0x7   :  { %s1386_s11 = smov 0   ;;  %s1388_s12 = smov 0  }
   0x8   :  { %s1390_s13 = smov 0   ;;  %s1392_s14 = smov 0  }
   0x9   :  { %s1394_s15 = smov 0   ;;  %s1396_s16 = smov 0  }
   0xa LB: > { %1649 = sst [smem:[#allocation9_spill]] %s1317_s14  ;;  %s1640_s17 = sadd.s32 4294967295, %s1325_s16   ;;  %s1325_s16 = sphi %s1396_s16, %s26_s16   ;;  %s1321_s15 = sphi %s1394_s15, %s1668_s15   ;;  %s1317_s14 = sphi %s1392_s14, %s1667_s14   ;;  %s1313_s13 = sphi %s1390_s13, %s1666_s13   ;;  %s1309_s12 = sphi %s1388_s12, %s1665_s12   ;;  %s1305_s11 = sphi %s1386_s11, %s1671_s11   ;;  %s1301_s10 = sphi %s1384_s10, %s1670_s10   ;;  %s1297_s30 = sphi %s1382_s30, %s1669_s30  }
   0xb   : > { %1650 = sst [smem:[#allocation10_spill]] %s1321_s15  ;;  %s1639_s18 = sadd.s32 4294967294, %s1325_s16  }
   0xc   : > { %s38_s19 = sadd.s32 1, %s1317_s14  ;;  %s45_s20 = sadd.s32 1, %s1321_s15 }
   0xd   : > { %p39_p0 = scmp.ge.s32.totalorder %s38_s19, 4  ;;  %p250_p1 = scmp.ne.s32.totalorder %s1305_s11, %s1301_s10 }
   0xe   : > { %p251_p2 = scmp.eq.s32.totalorder %s1640_s17, 7  ;;  %p256_p5 = scmp.ne.s32.totalorder %s1301_s10, %s1297_s30 }
   0xf   : > { %s1673_s19 = smov (%p39_p0, %s38_s19), 0  ;;  %s1675_s20 = smov (!%p39_p0, %s45_s20), %s1321_s15 }
  0x10   : > { %1651 = sst [smem:[#allocation11_spill]] %s1673_s19  ;;  %s234_s21 = ssub.s32 %s1317_s14, %s1673_s19 }
  0x11   : > { %p1435_p3 = por %p251_p2, %p250_p1  ;;  %p47_p4 = scmp.ge.s32.totalorder %s1675_s20, 2 }
  0x12   : > { %p257_p6 = scmp.eq.s32.totalorder %s1639_s18, 7  ;;  %p1015_p7 = scmp.ge.s32.totalorder %s1325_s16, 1 }
  0x13   : > { %s1677_s20 = smov (%p47_p4, %s1675_s20), 0  ;;  %p387_p9 = scmp.lt.s32.totalorder %s1325_s16, 9 }
  0x14   : > { %1653 = sst [smem:[#allocation12_spill]] %s1677_s20  ;;  %p1446_p8 = por %p257_p6, %p256_p5 }
  0x15   : > { %s233_s24 = ssub.s32 %s1321_s15, %s1677_s20  ;;  %s240_s25 = sadd.s32 1, %s1305_s11 }
  0x16   : > { %s235_s26 = sor.u32 %s234_s21, %s233_s24  ;;  %p388_p10 = pnand %p1015_p7, %p387_p9 }
  0x17   : > { %p238_p11 = scmp.eq.s32.totalorder %s235_s26, 0  ;;  %p466_p12 = scmp.lt.s32.totalorder (!%p388_p10), %s1309_s12, 3 }
  0x18   : > { %391 = sbr.rel (%p388_p10) target bundleno = 297 (0x129), region = 48  ;;  %p459_p13 = scmp.lt.s32.totalorder (!%p388_p10), %s1313_s13, 1 }
  0x19   : > { %s1455_s27 = scalar_select %p238_p11, %s1305_s11, %s240_s25  }
  0x1a   : > { %s1656_s1 = sld [smem:[#allocation15_spill]] (!%p388_p10)  ;;  %s1645_s14 = sand.u32 (!%p388_p10), 1, %s1301_s10  }
  0x1b   : > { %1655 = sst [smem:[#allocation13_spill]] %s1455_s27  ;;  %s1035_s15 = sshll.u32 (!%p388_p10), %s1313_s13, 2 }
  0x1c   : > { %s1657_s0 = sld [smem:[#allocation14_spill]] (!%p388_p10) }
  0x1d   : > { %v1327_v0 = vmov 0.0   ;;  %s1460_s28 = scalar_select %p466_p12, %s1309_s12, 3  ;;  %vm1328_vm0 = vmmov 0   ;;  %vm502_vm1 = vcmask 261120   ;;  %vm739_vm2 = vcmask 64512  }
  0x1e   : > { %1061 = vmatprep.subr.mxu0 %v1327_v0  ;;  %1072 = vmatprep.subr.mxu1 %v1327_v0  ;;  %s460_s29 = scalar_select %p459_p13, %s1313_s13, 1 }
  0x1f   : > { %1069 = vmatprep.mubr.msk.f32.mxu0 %vm1328_vm0, %v1327_v0  ;;  %1080 = vmatprep.mubr.msk.f32.mxu1 %vm1328_vm0, %v1327_v0  ;;  %s1043_s21 = sshll.u32 %s1460_s28, 5  ;;  %s486_s24 = scalar_lea.vmem %s1634_s5, %s1460_s28 }
  0x20   : > { %s470_s26 = scalar_lea.vmem %s1656_s1, %s1043_s21  ;;  %s475_s20 = scalar_lea.vmem %s1631_s2, %s1043_s21  ;;  %v1028_v16 = vld [vmem:[%s486_s24] ss:$0 sm:$0xff] }
  0x21   : > { %v494_v1 = vld [vmem:[%s470_s26 + $0x18] sm:$0xff]  ;;  %v493_v2 = vld [vmem:[%s470_s26 + $0x10] sm:$0xff]  ;;  %s1019_s19 = sshll.u32 %s460_s29, 3  ;;  %v492_v5 = vld [vmem:[%s470_s26 + $0x8] sm:$0xff]  ;;  %s480_s17 = scalar_lea.vmem %s1632_s3, %s1043_s21 }
  0x22   : > { %1062 = vmatpush3.msra.mxu0 %v494_v1  ;;  %v579_v3 = vld [vmem:[%s475_s20 + $0x18] sm:$0xff]  ;;  %v578_v4 = vld [vmem:[%s475_s20 + $0x10] sm:$0xff]  ;;  %s465_s27 = scalar_lea.vmem %s1657_s0, %s1019_s19  ;;  %v577_v6 = vld [vmem:[%s475_s20 + $0x8] sm:$0xff]  ;;  %s766_s29 = sadd.s32 %s1309_s12, %s1035_s15 }
  0x23   : > { %1063 = vmatprep.subr.mxu0 %v1327_v0  ;;  %1073 = vmatpush3.msra.mxu1 %v579_v3  ;;  %v491_v7 = vld [vmem:[%s470_s26] sm:$0xff]  ;;  %v660_v9 = vld [vmem:[%s480_s17 + $0x18] sm:$0xff]  ;;  %v659_v11 = vld [vmem:[%s480_s17 + $0x10] sm:$0xff]  ;;  %s489_s0 = scalar_lea.vmem %s1635_s6, %s1460_s28  ;;  %s1658_s13 = sadd.s32 4294967295, %s1325_s16  }
  0x24   : > { %1064 = vmatpush3.msra.mxu0 %v493_v2  ;;  %1074 = vmatprep.subr.mxu1 %v1327_v0  ;;  %v490_v8 = vld [vmem:[%s465_s27] sm:$0xff]  ;;  %v658_v12 = vld [vmem:[%s480_s17 + $0x8] sm:$0xff]  ;;  %s1490_s27 = sshll.u32 %s1645_s14, 3  ;;  %s1503_s1 = sand.u32 1, %s1658_s13  }
  0x25   : > { %1065 = vmatprep.subr.mxu0 %v1327_v0  ;;  %1075 = vmatpush3.msra.mxu1 %v578_v4  ;;  %v576_v10 = vld [vmem:[%s475_s20] sm:$0xff]  ;;  %s483_s20 = scalar_lea.vmem %s1633_s4, %s1460_s28  ;;  %s1505_s18 = sshll.u32 %s766_s29, 7 }
  0x26   : > { %1066 = vmatpush3.msra.mxu0 %v492_v5  ;;  %1076 = vmatprep.subr.mxu1 %v1327_v0  ;;  %v657_v13 = vld [vmem:[%s480_s17] sm:$0xff]  ;;  %s451_s19 = scalar_lea.vmem [#allocation4], %s1490_s27  ;;  %s444_s15 = scalar_lea.vmem [#allocation2], %s1490_s27 }
  0x27   : > { %1067 = vmatprep.subr.mxu0 %v1327_v0  ;;  %1077 = vmatpush3.msra.mxu1 %v577_v6  ;;  %v1026_v14 = vld [vmem:[%s483_s20] ss:$0 sm:$0xff]  ;;  %s786_s12 = sshll.u32 %s451_s19, 4  ;;  %s770_s20 = sshll.u32 %s444_s15, 4  ;;  %s1515_s12 = int_to_ptr.vmem [resolvable:$true] %s786_s12  ;;  %s1523_s20 = int_to_ptr.vmem [resolvable:$true] %s770_s20 }
  0x28   : > { %1068 = vmatpush3.msra.mxu0 %v491_v7  ;;  %1078 = vmatprep.subr.mxu1 %v1327_v0  ;;  %s1513_s29 = scalar_lea.hbm %s1637_s8, %s1505_s18  ;;  %s1521_s25 = scalar_lea.hbm %s1636_s7, %s1505_s18  ;;  %v1030_v23 = vld [vmem:[%s489_s0] ss:$0 sm:$0xff] }
  0x29   : > { %1070 = vmatmul.mubr.msk.f32.vlgmr.msra.gmra.mxu0 %vm502_vm1, %v490_v8  ;;  %1083 = vmatprep.subr.mxu0 %v1327_v0  ;;  %s1646_s17 = scalar_lea.vmem [#allocation6], %s1490_s27  ;;  %s1177_s21 = scalar_lea.vmem %s1515_s12, 128 }
  0x2a   : > { %1084 = vmatpush3.msra.mxu0 %v660_v9  ;;  %1079 = vmatpush3.msra.mxu1 %v576_v10  ;;  %s1530_s13 = sshll.u32 %s1646_s17, 4  ;;  %p1178_p0 = scmp.ne.s32.totalorder %s1515_s12, %s1177_s21  ;;  %s803_s13 = int_to_ptr.vmem [resolvable:$true] %s1530_s13 }
  0x2b   : > { %1085 = vmatprep.subr.mxu0 %v1327_v0  ;;  %1081 = vmatmul.mubr.msk.f32.vlgmr.msra.gmra.mxu1 %vm502_vm1, %v490_v8  ;;  %s1329_s26 = smov [#allocation4]  }
  0x2c   : > { %1086 = vmatpush3.msra.mxu0 %v659_v11  ;;  %1091 = vmatprep.mubr.msk.f32.mxu0 %vm1328_vm0, %v1327_v0  ;;  %p1179_p1 = pnand %p1178_p0, %p1435_p3  ;;  %s1181_s24 = sshll.u32 %s1329_s26, 4  ;;  %s1182_s24 = int_to_ptr.vmem [resolvable:$false] %s1181_s24 }
  0x2d   : > { %1087 = vmatprep.subr.mxu0 %v1327_v0  ;;  %s1183_s14 = scalar_lea.vmem %s1182_s24, 256  ;;  %p1184_p4 = scmp.lt.s32.totalorder %s1515_s12, %s1182_s24 }
  0x2e   : > { %1088 = vmatpush3.msra.mxu0 %v658_v12  ;;  %p1180_p2 = pneg %p1179_p1  ;;  %p1185_p5 = scmp.lt.s32.totalorder %s1183_s14, %s1177_s21 }
  0x2f   : > { %1089 = vmatprep.subr.mxu0 %v1327_v0 }
  0x30   : > { %1090 = vmatpush3.msra.mxu0 %v657_v13  ;;  %p1186_p6 = por %p1185_p5, %p1184_p4 }
  0x31   : > { %1092 = vmatmul.mubr.msk.f32.vlgmr.msra.gmra.mxu0 %vm502_vm1, %v490_v8 }
  0x32   : > { %p1187_p7 = pnand %p1186_p6, %p1180_p2 }
  0xe9   : > { %v572_v15 = vpop.f32.mrf.mxu0 }
  0xea   : > { %v573_v17 = vadd.f32 %v1026_v14, %v572_v15 }
  0xeb   : > { %v1071_v18 = vpop.f32.mrf.mxu0  ;;  %v653_v19 = vpop.f32.mrf.mxu1 }
  0xec   : > { %v738_v20 = vmul.f32 0.35355338, %v573_v17  ;;  %v654_v21 = vadd.f32 %v1028_v16, %v653_v19 }
  0xed   : > { %v1082_v22 = vpop.f32.mrf.mxu1 }
  0xee   : > { %741 = vst.msk [vmem:[%s451_s19] sm:$0xff] %vm739_vm2, %v654_v21  ;;  %740 = vst.msk [vmem:[%s444_s15] sm:$0xff] %vm739_vm2, %v738_v20 }
  0xef   : > { %1190 = shalt.err (!%p1187_p7)
}
  0xf0   : > { %s1191_s0 = scalar_lea.hbm %s1513_s29, 128  ;;  %s1195_s26 = scalar_lea.hbm %s1637_s8, 1024 }
  0xf1   : > { %p1192_p9 = scmp.ne.s32.totalorder %s1513_s29, %s1191_s0  ;;  %p1196_p12 = scmp.lt.s32.totalorder %s1513_s29, %s1637_s8 }
  0xf2   : > { %p1197_p13 = scmp.lt.s32.totalorder %s1195_s26, %s1191_s0 }
  0xf3   : > { %p1193_p10 = pnand %p1192_p9, %p1435_p3 }
  0xf4   : > { %p1198_p0 = por %p1197_p13, %p1196_p12 }
  0xf5   : > { %p1194_p11 = pneg %p1193_p10 }
  0xf7   : > { %p1199_p1 = pnand %p1198_p0, %p1194_p11 }
  0xf9   : > { %1202 = shalt.err (!%p1199_p1)
}
  0xfa   : > { %s1659_s14 = scalar_lea.sflag [#allocation5], %s1503_s1  ;;  %s1660_s21 = sand.u32 1, %s1301_s10  }
  0xfb   : > { %1095 = dma.vmem_to_hbm [thread:$0]  (%p1435_p3), %s1515_s12, 128, %s1513_s29, %s1659_s14  }
  0xfc   : > { %s744_s24 = scalar_lea.sflag [#allocation3], %s1660_s21  ;;  %s1203_s17 = scalar_lea.vmem %s1523_s20, 128 }
  0xfd   : > { %p1204_p2 = scmp.ne.s32.totalorder %s1523_s20, %s1203_s17  ;;  %s1330_s28 = smov [#allocation2]  }
  0xfe   : > { %s1207_s0 = sshll.u32 %s1330_s28, 4  ;;  %s1208_s0 = int_to_ptr.vmem [resolvable:$false] %s1207_s0 }
  0xff   : > { %p1205_p4 = pnand %p1204_p2, %p1435_p3  ;;  %s1209_s19 = scalar_lea.vmem %s1208_s0, 256 }
 0x100   : > { %p1210_p6 = scmp.lt.s32.totalorder %s1523_s20, %s1208_s0  ;;  %p1211_p7 = scmp.lt.s32.totalorder %s1209_s19, %s1203_s17 }
 0x101   : > { %p1206_p5 = pneg %p1205_p4 }
 0x102   : > { %p1212_p9 = por %p1211_p7, %p1210_p6 }
 0x104   : > { %p1213_p10 = pnand %p1212_p9, %p1206_p5 }
 0x106   : > { %1216 = shalt.err (!%p1213_p10)
}
 0x107   : > { %s1217_s12 = scalar_lea.hbm %s1521_s25, 128  ;;  %s1221_s26 = scalar_lea.hbm %s1636_s7, 1024 }
 0x108   : > { %p1218_p11 = scmp.ne.s32.totalorder %s1521_s25, %s1217_s12  ;;  %p1222_p0 = scmp.lt.s32.totalorder %s1521_s25, %s1636_s7 }
 0x109   : > { %p1223_p1 = scmp.lt.s32.totalorder %s1221_s26, %s1217_s12 }
 0x10a   : > { %p1219_p12 = pnand %p1218_p11, %p1435_p3 }
 0x10b   : > { %p1224_p2 = por %p1223_p1, %p1222_p0 }
 0x10c   : > { %p1220_p13 = pneg %p1219_p12 }
 0x10e   : > { %p1225_p4 = pnand %p1224_p2, %p1220_p13 }
 0x110   : > { %1228 = shalt.err (!%p1225_p4)
}
 0x111   : > { %1094 = dma.vmem_to_hbm [thread:$0]  (%p1435_p3), %s1523_s20, 128, %s1521_s25, %s744_s24   ;;  %v734_v24 = vpop.f32.mrf.mxu0 }
 0x112   : > { %v735_v25 = vadd.f32 %v1030_v23, %v734_v24  ;;  %s800_s0 = scalar_lea.hbm %s1638_s9, %s1505_s18  ;;  %s1661_s19 = scalar_lea.vmem [#allocation6], %s1490_s27 }
 0x113   : > { %v1093_v26 = vpop.f32.mrf.mxu0  ;;  %s1229_s12 = scalar_lea.vmem %s803_s13, 128  ;;  %s1331_s29 = smov [#allocation6]  }
 0x114   : > { %742 = vst.msk [vmem:[%s1661_s19] sm:$0xff] %vm739_vm2, %v735_v25  ;;  %p1230_p5 = scmp.ne.s32.totalorder %s803_s13, %s1229_s12  ;;  %s1233_s15 = sshll.u32 %s1331_s29, 4  ;;  %s1234_s15 = int_to_ptr.vmem [resolvable:$false] %s1233_s15 }
 0x115   : > { %s1235_s20 = scalar_lea.vmem %s1234_s15, 256  ;;  %p1236_p9 = scmp.lt.s32.totalorder %s803_s13, %s1234_s15 }
 0x116   : > { %p1231_p6 = pnand %p1230_p5, %p1435_p3  ;;  %p1237_p10 = scmp.lt.s32.totalorder %s1235_s20, %s1229_s12 }
 0x118   : > { %p1232_p7 = pneg %p1231_p6  ;;  %p1238_p11 = por %p1237_p10, %p1236_p9 }
 0x11a   : > { %p1239_p12 = pnand %p1238_p11, %p1232_p7 }
 0x11c   : > { %1242 = shalt.err (!%p1239_p12)
}
 0x11d   : > { %s1243_s18 = scalar_lea.hbm %s800_s0, 128  ;;  %s1247_s24 = scalar_lea.hbm %s1638_s9, 1024 }
 0x11e   : > { %p1244_p13 = scmp.ne.s32.totalorder %s800_s0, %s1243_s18  ;;  %p1248_p2 = scmp.lt.s32.totalorder %s800_s0, %s1638_s9 }
 0x11f   : > { %p1249_p4 = scmp.lt.s32.totalorder %s1247_s24, %s1243_s18 }
 0x120   : > { %p1245_p0 = pnand %p1244_p13, %p1435_p3 }
 0x121   : > { %p1250_p5 = por %p1249_p4, %p1248_p2 }
 0x122   : > { %p1246_p1 = pneg %p1245_p0 }
 0x124   : > { %p1251_p6 = pnand %p1250_p5, %p1246_p1 }
 0x126   : > { %1254 = shalt.err (!%p1251_p6)
}
 0x127   : > { %s1662_s21 = scalar_lea.sflag [#allocation5], %s1503_s1 }
 0x128   : > { %1096 = dma.vmem_to_hbm [thread:$0]  (%p1435_p3), %s803_s13, 128, %s800_s0, %s1662_s21  }
 0x129 PF: > { %p1110_p7 = scmp.ge.s32.totalorder %s1325_s16, 2  ;;  %s814_s17 = sand.u32 1, %s1297_s30  }
 0x12a   : > { %s815_s28 = scalar_lea.sflag [#allocation3], %s814_s17 }
 0x12b   : > { %p1101_p9 = pnand %p1110_p7, %p1446_p8 }
 0x12d   : > { %p1102_p10 = pneg %p1101_p9 }
 0x12f   : > { %1288 = dma.done.wait (%p1102_p10), %s815_s28, 128  }
 0x130   : > { %1290 = vsyncadd (%p1102_p10), %s815_s28, 4294967168  ;;  %s1663_s19 = sadd.s32 4294967294, %s1325_s16  }
 0x131   : > { %s823_s12 = sand.u32 1, %s1663_s19  }
 0x132   : > { %s824_s29 = scalar_lea.sflag [#allocation5], %s823_s12 }
 0x133   : > { %1292 = dma.done.wait (%p1102_p10), %s824_s29, 256  }
 0x134   : > { %1294 = vsyncadd (%p1102_p10), %s824_s29, 4294967040  ;;  %s26_s16 = sadd.s32 1, %s1325_s16   ;;  %s1664_s1 = sld [smem:[#allocation13_spill]] }
 0x135   : > { %p23_p3 = scmp.ge.s32.totalorder %s26_s16, 10   ;;  %s1665_s12 = sld [smem:[#allocation9_spill]] }
 0x136   : > { %s1666_s13 = sld [smem:[#allocation10_spill]]  ;;  %s1669_s30 = smov %s1301_s10 }
 0x137   : > { %s1667_s14 = sld [smem:[#allocation11_spill]]  ;;  %s1670_s10 = smov %s1305_s11 }
 0x138   : > { %s1668_s15 = sld [smem:[#allocation12_spill]]  ;;  %25 = sbr.rel (!%p23_p3) target bundleno = 10 (0xa), region = 133 }
 0x13a   : > { %s1671_s11 = smov %s1664_s1 }
 0x13d   :  { %838 = vsyncpa [#allocation3], 1 }
 0x13e   :  { %840 = vsyncpa [#allocation3 + $0x1], 1 }
 0x13f   :  { %841 = vsyncpa [#allocation5], 1 }
 0x140   :  { %843 = vsyncpa [#allocation5 + $0x1], 1 }

</bundles_post_ra>
